<compile_context>
chip_gen: v7x
topology: tpu7x:2x2x1
jax: 0.10.0
libtpu: 0.0.40
codegen_flags: <defaults>
</compile_context>

<pallas_src>
import functools

import jax
import jax.numpy as jnp
import numpy as np
from jax import lax
from jax.experimental import pallas as pl
from jax.experimental.pallas import tpu as pltpu

EPS = 1e-5


# ----------------------------------------------------------------------------
# Helpers
# ----------------------------------------------------------------------------
def _elu(y):
    """ELU in f32.  Negative branch uses exp(y)-1 directly (clamped so the
    unselected branch never overflows); Mosaic-safe alternative to expm1."""
    y = y.astype(jnp.float32)
    return jnp.where(y > 0.0, y, jnp.exp(jnp.minimum(y, 0.0)) - 1.0)


# ----------------------------------------------------------------------------
# Fused kernel: conv1+BN1+ELU -> conv2+BN2+ELU -> (1x1 downsample)+residual+ELU
# ----------------------------------------------------------------------------
def temporal_block_kernel(x_ref, w1_ref, s1_ref, w2_ref, s2_ref, *rest,
                          dilation, padding, k_taps, multi_tile, has_downsample):
    """Grid = (batch, L tiles).  One batch element x one L tile per step.

    x_ref:   (1, C_in, Lt)         input block (compute dtype)
    w1_ref:  (C_out, K*C_in)       conv1 weights, im2col layout, BN1 scale folded
    s1_ref:  (C_out, 1)            BN1 shift (beta - mean*scale), f32
    w2_ref:  (C_out, K*C_out)      conv2 weights, BN2 scale folded
    s2_ref:  (C_out, 1)            BN2 shift, f32
    [wds_ref:(C_out, C_in), bds_ref:(C_out, 1)]   only if has_downsample
    o_ref:   (1, C_out, Lt)
    xcol_ref:(K*C_in,  Lt)         VMEM im2col staging for conv1
    hcol_ref:(K*C_out, Lt)         VMEM im2col staging for conv2
    xt_ref:  (C_in,  max(P,1))     carried causal halo of x (zeros at first tile)
    ht_ref:  (C_out, max(P,1))     carried causal halo of h (zeros at first tile)
    """
    if has_downsample:
        wds_ref, bds_ref, o_ref, xcol_ref, hcol_ref, xt_ref, ht_ref = rest
    else:
        o_ref, xcol_ref, hcol_ref, xt_ref, ht_ref = rest

    c_in = x_ref.shape[1]
    c_out, lt = o_ref.shape[1], o_ref.shape[2]
    cdt = xcol_ref.dtype                      # matmul-operand (compute) dtype
    h0 = (k_taps - 1) * c_out                 # row offset of the unshifted h block

    # Causal carry: last `padding` columns of x / h from the previous L tile.
    # At the first L tile of every batch element this is the causal zero padding.
    # Zero-fill happens only here (pl.when), never per step.
    @pl.when(pl.program_id(1) == 0)
    def _init_carry():
        xt_ref[...] = jnp.zeros_like(xt_ref)
        ht_ref[...] = jnp.zeros_like(ht_ref)

    # ---- conv1: im2col from ref slices, ONE MXU matmul, folded BN1, ELU -----
    for k in range(k_taps):                   # static, unrolled over taps
        s = padding - k * dilation            # halo/zero columns on the left
        r0, r1 = k * c_in, (k + 1) * c_in
        left = min(s, lt)
        if left > 0:
            xcol_ref[r0:r1, :left] = xt_ref[:, k * dilation:k * dilation + left]
        if lt - s > 0:
            xcol_ref[r0:r1, s:] = x_ref[0, :, :lt - s]
    acc1 = jnp.dot(w1_ref[...], xcol_ref[...], preferred_element_type=jnp.float32)
    h = _elu(acc1 + s1_ref[...])              # (C_out, Lt), f32

    # ---- conv2: im2col of h (tap K-1 block holds the unshifted h) -----------
    hcol_ref[h0:, :] = h.astype(cdt)
    for k in range(k_taps - 1):
        s = padding - k * dilation
        r0, r1 = k * c_out, (k + 1) * c_out
        left = min(s, lt)
        if left > 0:
            hcol_ref[r0:r1, :left] = ht_ref[:, k * dilation:k * dilation + left]
        if lt - s > 0:
            hcol_ref[r0:r1, s:] = hcol_ref[h0:, :lt - s]

    # Carry the halo for the next L tile (reads of the old carry are done).
    if multi_tile and padding > 0:
        xt_ref[...] = x_ref[0, :, lt - padding:]
        ht_ref[...] = hcol_ref[h0:, lt - padding:]

    acc2 = jnp.dot(w2_ref[...], hcol_ref[...], preferred_element_type=jnp.float32)
    out2 = _elu(acc2 + s2_ref[...])           # (C_out, Lt), f32

    # ---- residual: identity or 1x1 downsample conv (+bias), final ELU -------
    if has_downsample:
        res = jnp.dot(wds_ref[...], x_ref[0],
                      preferred_element_type=jnp.float32) + bds_ref[...]
    else:
        res = x_ref[0].astype(jnp.float32)
    o_ref[0] = _elu(out2 + res).astype(o_ref.dtype)


# ----------------------------------------------------------------------------
# Wrapper
# ----------------------------------------------------------------------------
def _fold_bn_im2col(w, gamma, beta, mean, var, compute_dtype):
    """w: (C_out, C_in, K) -> (C_out, K*C_in) im2col layout, BN scale folded in."""
    c_out, c_in, k = w.shape
    scale = gamma / jnp.sqrt(var + EPS)                                   # (C_out,)
    w_flat = (jnp.transpose(w, (0, 2, 1)) * scale[:, None, None]).reshape(c_out, k * c_in)
    shift = (beta - mean * scale).reshape(-1, 1).astype(jnp.float32)      # (C_out, 1)
    return w_flat.astype(compute_dtype), shift


def temporal_block_forward(x, params, *, padding, dilation,
                           compute_dtype=None, out_dtype=None, l_tile=None):
    """x: (N, C_in, L).  Returns (N, C_out, L)."""
    n, c_in, length = x.shape
    c_out, _, k = params["w1"].shape
    assert padding == dilation * (k - 1), \
        "causal TCN setting required: padding == dilation * (kernel_size - 1)"

    compute_dtype = x.dtype if compute_dtype is None else compute_dtype
    out_dtype = x.dtype if out_dtype is None else out_dtype

    w1f, s1 = _fold_bn_im2col(params["w1"], params["g1"], params["b1"],
                              params["m1"], params["v1"], compute_dtype)
    w2f, s2 = _fold_bn_im2col(params["w2"], params["g2"], params["b2"],
                              params["m2"], params["v2"], compute_dtype)

    w_ds = params.get("w_ds")
    has_ds = w_ds is not None
    if has_ds:
        wds = w_ds.reshape(c_out, c_in).astype(compute_dtype)
        bds = params["b_ds"].reshape(c_out, 1).astype(jnp.float32)
    else:
        assert c_in == c_out, "identity residual requires n_inputs == n_outputs"

    x_in = x.astype(compute_dtype)
    isz = jnp.dtype(compute_dtype).itemsize
    osz = jnp.dtype(out_dtype).itemsize
    tail_w = max(padding, 1)

    # Accurate per-grid-step VMEM estimate (includes the f32 intermediates the
    # kernel materializes and does not double-charge single-buffered constants).
    def vmem_bytes(lt, const_bufs):
        x_io = 2 * c_in * lt * isz                              # double-buffered input block
        o_io = 2 * c_out * lt * osz                             # double-buffered output block
        w_elems = c_out * k * c_in + c_out * k * c_out + (c_out * c_in if has_ds else 0)
        consts = const_bufs * (w_elems * isz + (3 if has_ds else 2) * c_out * 4)
        scratch = (k * (c_in + c_out) * lt + (c_in + c_out) * tail_w) * isz
        interm = 5 * c_out * lt * 4                             # acc1/h, acc2/out2, res (f32)
        return x_io + o_io + consts + scratch + interm

    # Generation-dependent VMEM cap: ~100 MiB on 128 MiB parts (v5e/v6e),
    # <=48 MiB on 64 MiB parts (v7x).
    try:
        phys_vmem = pltpu.get_tpu_info().vmem_capacity_bytes
    except Exception:
        phys_vmem = 64 * 1024 * 1024                            # conservative (v7x)
    cap = (100 if phys_vmem >= 128 * 1024 * 1024 else 48) * 1024 * 1024
    budget = int(0.70 * cap)

    # L-tile selection: single tile when it fits, else the biggest 128-lane
    # multiple that fits the budget (the causal halo is carried across tiles).
    if l_tile is not None:
        lt = min(int(l_tile), length)
    elif length <= 128 or vmem_bytes(length, 2) <= budget:
        lt = length
    else:
        lt = 128 * max(1, pl.cdiv(padding, 128))
        while lt + 128 < length and vmem_bytes(lt + 128, 2) <= budget:
            lt += 128
        lt = min(lt, length)

    num_l = pl.cdiv(length, lt)
    if num_l > 1:
        if lt % 128 != 0:
            raise ValueError("L tile must be a multiple of 128 lanes when tiling L")
        if lt < padding:
            raise ValueError("L tile must be >= padding to carry the causal halo")

    kernel = functools.partial(temporal_block_kernel,
                               dilation=dilation, padding=padding, k_taps=k,
                               multi_tile=(num_l > 1), has_downsample=has_ds)

    def run(single_buffer_consts):
        def cspec(shape):
            if single_buffer_consts:
                return pl.BlockSpec(shape, lambda b, l: (0, 0),
                                    pipeline_mode=pl.Buffered(1))
            return pl.BlockSpec(shape, lambda b, l: (0, 0))

        in_specs = [pl.BlockSpec((1, c_in, lt), lambda b, l: (b, 0, l)),
                    cspec((c_out, k * c_in)), cspec((c_out, 1)),
                    cspec((c_out, k * c_out)), cspec((c_out, 1))]
        args = [x_in, w1f, s1, w2f, s2]
        if has_ds:
            in_specs += [cspec((c_out, c_in)), cspec((c_out, 1))]
            args += [wds, bds]

        const_bufs = 1 if single_buffer_consts else 2
        vmem_limit = int(min(cap, max(16 * 1024 * 1024,
                                      int(1.3 * vmem_bytes(lt, const_bufs)))))

        return pl.pallas_call(
            kernel,
            out_shape=jax.ShapeDtypeStruct((n, c_out, length), out_dtype),
            grid=(n, num_l),
            in_specs=in_specs,
            out_specs=pl.BlockSpec((1, c_out, lt), lambda b, l: (b, 0, l)),
            scratch_shapes=[
                pltpu.VMEM((k * c_in, lt), compute_dtype),    # conv1 im2col
                pltpu.VMEM((k * c_out, lt), compute_dtype),   # conv2 im2col
                pltpu.VMEM((c_in, tail_w), compute_dtype),    # x causal halo carry
                pltpu.VMEM((c_out, tail_w), compute_dtype),   # h causal halo carry
            ],
            compiler_params=pltpu.CompilerParams(
                dimension_semantics=("parallel", "arbitrary"),
                vmem_limit_bytes=vmem_limit,
            ),
        )(*args)

    try:
        return run(True)      # single-buffer the constant weight/shift operands
    except Exception:
        return run(False)     # pl.Buffered(1) unsupported -> default double buffering


# ----------------------------------------------------------------------------
# Pure-JAX reference (eval-mode semantics, for correctness check)
# ----------------------------------------------------------------------------
def ref_forward(x, params, *, padding, dilation):
    def conv1d(inp, w, pad, dil):
        return lax.conv_general_dilated(
            inp, w, window_strides=(1,), padding=[(pad, pad)],
            rhs_dilation=(dil,), dimension_numbers=("NCH", "OIH", "NCH"))

    def bn(y, g, b, m, v):
        return (y - m[None, :, None]) / jnp.sqrt(v[None, :, None] + EPS) * \
            g[None, :, None] + b[None, :, None]

    h = conv1d(x, params["w1"], padding, dilation)[:, :, :-padding]
    h = _elu(bn(h, params["g1"], params["b1"], params["m1"], params["v1"]))
    h = conv1d(h, params["w2"], padding, dilation)[:, :, :-padding]
    h = _elu(bn(h, params["g2"], params["b2"], params["m2"], params["v2"]))
    w_ds = params.get("w_ds")
    if w_ds is None:
        res = x
    else:
        res = conv1d(x, w_ds, 0, 1) + params["b_ds"][None, :, None]
    return _elu(h + res)


def _make_params(key, c_in, c_out, k, with_downsample):
    ks = jax.random.split(key, 12)
    p = {
        "w1": 0.3 * jax.random.normal(ks[0], (c_out, c_in, k), jnp.float32),
        "w2": 0.3 * jax.random.normal(ks[1], (c_out, c_out, k), jnp.float32),
        "g1": 1.0 + 0.1 * jax.random.normal(ks[2], (c_out,), jnp.float32),
        "b1": 0.1 * jax.random.normal(ks[3], (c_out,), jnp.float32),
        "m1": 0.1 * jax.random.normal(ks[4], (c_out,), jnp.float32),
        "v1": 1.0 + 0.1 * jax.random.uniform(ks[5], (c_out,), jnp.float32),
        "g2": 1.0 + 0.1 * jax.random.normal(ks[6], (c_out,), jnp.float32),
        "b2": 0.1 * jax.random.normal(ks[7], (c_out,), jnp.float32),
        "m2": 0.1 * jax.random.normal(ks[8], (c_out,), jnp.float32),
        "v2": 1.0 + 0.1 * jax.random.uniform(ks[9], (c_out,), jnp.float32),
    }
    if with_downsample:
        p["w_ds"] = 0.3 * jax.random.normal(ks[10], (c_out, c_in, 1), jnp.float32)
        p["b_ds"] = 0.1 * jax.random.normal(ks[11], (c_out,), jnp.float32)
    return p


# ----------------------------------------------------------------------------
# Main
# ----------------------------------------------------------------------------
if __name__ == "__main__":
    # Small shapes consistent with TemporalBlock (Conv1d: N, C, L).
    N, C_IN, C_OUT, L = 2, 4, 8, 16
    K, DIL = 3, 2
    PAD = (K - 1) * DIL  # causal padding = 4

    key = jax.random.PRNGKey(0)
    kp, kx, kp2, kx2, kx3 = jax.random.split(key, 5)

    # --- test 1: n_inputs != n_outputs (downsample path), f32, single L tile -
    params = _make_params(kp, C_IN, C_OUT, K, with_downsample=True)
    x = jax.random.normal(kx, (N, C_IN, L), jnp.float32)

    out = jax.block_until_ready(
        temporal_block_forward(x, params, padding=PAD, dilation=DIL))
    ref = jax.block_until_ready(ref_forward(x, params, padding=PAD, dilation=DIL))
    np.testing.assert_allclose(np.asarray(out), np.asarray(ref), rtol=1e-5, atol=1e-5)
    assert out.shape == (N, C_OUT, L), out.shape

    # --- test 2: n_inputs == n_outputs (identity residual), f32 --------------
    C_EQ = 6
    params_eq = _make_params(kp2, C_EQ, C_EQ, K, with_downsample=False)
    x_eq = jax.random.normal(kx2, (N, C_EQ, L), jnp.float32)
    out_eq = jax.block_until_ready(
        temporal_block_forward(x_eq, params_eq, padding=PAD, dilation=DIL))
    ref_eq = jax.block_until_ready(
        ref_forward(x_eq, params_eq, padding=PAD, dilation=DIL))
    np.testing.assert_allclose(np.asarray(out_eq), np.asarray(ref_eq),
                               rtol=1e-5, atol=1e-5)

    # --- test 3: multi-L-tile path (causal halo carried across 128-lane tiles)
    L_LONG = 256
    x_long = jax.random.normal(kx3, (N, C_IN, L_LONG), jnp.float32)
    out_lt = jax.block_until_ready(
        temporal_block_forward(x_long, params, padding=PAD, dilation=DIL, l_tile=128))
    ref_lt = jax.block_until_ready(
        ref_forward(x_long, params, padding=PAD, dilation=DIL))
    np.testing.assert_allclose(np.asarray(out_lt), np.asarray(ref_lt),
                               rtol=1e-5, atol=1e-5)

    # --- test 4: bf16 matmul operands / bf16 output (f32 accumulation) -------
    out_bf16 = jax.block_until_ready(
        temporal_block_forward(x.astype(jnp.bfloat16), params,
                               padding=PAD, dilation=DIL,
                               compute_dtype=jnp.bfloat16))
    np.testing.assert_allclose(np.asarray(out_bf16).astype(np.float32),
                               np.asarray(ref), rtol=1e-1, atol=1e-1)

    print("KERNEL_OK")
</pallas_src>

<mosaic_0001>
module attributes {stable_mosaic.version = 11 : i64} {
  func.func @temporal_block_kernel(%arg0: i32, %arg1: i32, %arg2: memref<1x4x16xf32, #tpu.memory_space<vmem>>, %arg3: memref<8x12xf32, #tpu.memory_space<vmem>>, %arg4: memref<8x1xf32, #tpu.memory_space<vmem>>, %arg5: memref<8x24xf32, #tpu.memory_space<vmem>>, %arg6: memref<8x1xf32, #tpu.memory_space<vmem>>, %arg7: memref<8x4xf32, #tpu.memory_space<vmem>>, %arg8: memref<8x1xf32, #tpu.memory_space<vmem>>, %arg9: memref<1x8x16xf32, #tpu.memory_space<vmem>>, %arg10: memref<12x16xf32, #tpu.memory_space<vmem>>, %arg11: memref<24x16xf32, #tpu.memory_space<vmem>>, %arg12: memref<4x4xf32, #tpu.memory_space<vmem>>, %arg13: memref<8x4xf32, #tpu.memory_space<vmem>>) attributes {dimension_semantics = [#tpu.dimension_semantics<parallel>, #tpu.dimension_semantics<arbitrary>], iteration_bounds = array<i64: 2, 1>, scalar_prefetch = 0 : i64, scratch_operands = 4 : i64, tpu.core_type = #tpu.core_type<tc>, window_params = [{transform_indices = @transform_0, window_bounds = array<i64: 1, 4, 16>}, {pipeline_mode = #tpu.pipeline_mode<synchronous>, transform_indices = @transform_1, window_bounds = array<i64: 8, 12>}, {pipeline_mode = #tpu.pipeline_mode<synchronous>, transform_indices = @transform_2, window_bounds = array<i64: 8, 1>}, {pipeline_mode = #tpu.pipeline_mode<synchronous>, transform_indices = @transform_3, window_bounds = array<i64: 8, 24>}, {pipeline_mode = #tpu.pipeline_mode<synchronous>, transform_indices = @transform_4, window_bounds = array<i64: 8, 1>}, {pipeline_mode = #tpu.pipeline_mode<synchronous>, transform_indices = @transform_5, window_bounds = array<i64: 8, 4>}, {pipeline_mode = #tpu.pipeline_mode<synchronous>, transform_indices = @transform_6, window_bounds = array<i64: 8, 1>}, {transform_indices = @transform_7, window_bounds = array<i64: 1, 8, 16>}]} {
    %c0_i32 = arith.constant 0 : i32
    %0 = arith.cmpi eq, %arg1, %c0_i32 : i32
    %1 = arith.extui %0 : i1 to i32
    %c0_i32_0 = arith.constant 0 : i32
    %2 = arith.cmpi ne, %1, %c0_i32_0 : i32
    scf.if %2 {
      %cst_70 = arith.constant 0.000000e+00 : f32
      %72 = vector.broadcast %cst_70 : f32 to vector<4x4xf32>
      %c0_71 = arith.constant 0 : index
      %c0_72 = arith.constant 0 : index
      %73 = vector.load %arg12[%c0_71, %c0_72] : memref<4x4xf32, #tpu.memory_space<vmem>>, vector<4x4xf32>
      tpu.vector_store %arg12[%c0_71, %c0_72], %72 {strides = array<i32>} : memref<4x4xf32, #tpu.memory_space<vmem>>, vector<4x4xf32>,
      %cst_73 = arith.constant 0.000000e+00 : f32
      %74 = vector.broadcast %cst_73 : f32 to vector<8x4xf32>
      %c0_74 = arith.constant 0 : index
      %c0_75 = arith.constant 0 : index
      %75 = vector.load %arg13[%c0_74, %c0_75] : memref<8x4xf32, #tpu.memory_space<vmem>>, vector<8x4xf32>
      tpu.vector_store %arg13[%c0_74, %c0_75], %74 {strides = array<i32>} : memref<8x4xf32, #tpu.memory_space<vmem>>, vector<8x4xf32>,
    } else {
    }
    %c0 = arith.constant 0 : index
    %c0_1 = arith.constant 0 : index
    %3 = vector.load %arg12[%c0, %c0_1] : memref<4x4xf32, #tpu.memory_space<vmem>>, vector<4x4xf32>
    %c0_2 = arith.constant 0 : index
    %c0_3 = arith.constant 0 : index
    %4 = vector.load %arg10[%c0_2, %c0_3] : memref<12x16xf32, #tpu.memory_space<vmem>>, vector<4x4xf32>
    tpu.vector_store %arg10[%c0_2, %c0_3], %3 {strides = array<i32>} : memref<12x16xf32, #tpu.memory_space<vmem>>, vector<4x4xf32>,
    %c0_4 = arith.constant 0 : index
    %c0_5 = arith.constant 0 : index
    %c0_6 = arith.constant 0 : index
    %5 = vector.load %arg2[%c0_4, %c0_5, %c0_6] : memref<1x4x16xf32, #tpu.memory_space<vmem>>, vector<1x4x12xf32>
    %6 = vector.shape_cast %5 : vector<1x4x12xf32> to vector<4x12xf32>
    %c0_7 = arith.constant 0 : index
    %c4 = arith.constant 4 : index
    %7 = vector.load %arg10[%c0_7, %c4] : memref<12x16xf32, #tpu.memory_space<vmem>>, vector<4x12xf32>
    tpu.vector_store %arg10[%c0_7, %c4], %6 {strides = array<i32>} : memref<12x16xf32, #tpu.memory_space<vmem>>, vector<4x12xf32>,
    %c0_8 = arith.constant 0 : index
    %c2 = arith.constant 2 : index
    %8 = vector.load %arg12[%c0_8, %c2] : memref<4x4xf32, #tpu.memory_space<vmem>>, vector<4x2xf32>
    %c4_9 = arith.constant 4 : index
    %c0_10 = arith.constant 0 : index
    %9 = vector.load %arg10[%c4_9, %c0_10] : memref<12x16xf32, #tpu.memory_space<vmem>>, vector<4x2xf32>
    tpu.vector_store %arg10[%c4_9, %c0_10], %8 {strides = array<i32>} : memref<12x16xf32, #tpu.memory_space<vmem>>, vector<4x2xf32>,
    %c0_11 = arith.constant 0 : index
    %c0_12 = arith.constant 0 : index
    %c0_13 = arith.constant 0 : index
    %10 = vector.load %arg2[%c0_11, %c0_12, %c0_13] : memref<1x4x16xf32, #tpu.memory_space<vmem>>, vector<1x4x14xf32>
    %11 = vector.shape_cast %10 : vector<1x4x14xf32> to vector<4x14xf32>
    %c4_14 = arith.constant 4 : index
    %c2_15 = arith.constant 2 : index
    %12 = vector.load %arg10[%c4_14, %c2_15] : memref<12x16xf32, #tpu.memory_space<vmem>>, vector<4x14xf32>
    tpu.vector_store %arg10[%c4_14, %c2_15], %11 {strides = array<i32>} : memref<12x16xf32, #tpu.memory_space<vmem>>, vector<4x14xf32>,
    %c0_16 = arith.constant 0 : index
    %c0_17 = arith.constant 0 : index
    %c0_18 = arith.constant 0 : index
    %13 = vector.load %arg2[%c0_16, %c0_17, %c0_18] : memref<1x4x16xf32, #tpu.memory_space<vmem>>, vector<1x4x16xf32>
    %14 = vector.shape_cast %13 : vector<1x4x16xf32> to vector<4x16xf32>
    %c8 = arith.constant 8 : index
    %c0_19 = arith.constant 0 : index
    %15 = vector.load %arg10[%c8, %c0_19] : memref<12x16xf32, #tpu.memory_space<vmem>>, vector<4x16xf32>
    tpu.vector_store %arg10[%c8, %c0_19], %14 {strides = array<i32>} : memref<12x16xf32, #tpu.memory_space<vmem>>, vector<4x16xf32>,
    %c0_20 = arith.constant 0 : index
    %c0_21 = arith.constant 0 : index
    %16 = vector.load %arg3[%c0_20, %c0_21] : memref<8x12xf32, #tpu.memory_space<vmem>>, vector<8x12xf32>
    %c0_22 = arith.constant 0 : index
    %c0_23 = arith.constant 0 : index
    %17 = vector.load %arg10[%c0_22, %c0_23] : memref<12x16xf32, #tpu.memory_space<vmem>>, vector<12x16xf32>
    %cst = arith.constant dense<0.000000e+00> : vector<8x16xf32>
    %18 = tpu.matmul %16, %17, %cst {dimension_numbers = #tpu.dot_dimension_numbers<[1], [0], [0], [1], [0, 0, 1, 1], [], []>} : vector<8x12xf32>, vector<12x16xf32>, vector<8x16xf32> -> vector<8x16xf32>
    %c0_24 = arith.constant 0 : index
    %c0_25 = arith.constant 0 : index
    %19 = vector.load %arg4[%c0_24, %c0_25] : memref<8x1xf32, #tpu.memory_space<vmem>>, vector<8x1xf32>
    %20 = vector.broadcast %19 : vector<8x1xf32> to vector<8x16xf32>
    %21 = arith.addf %18, %20 : vector<8x16xf32>
    %cst_26 = arith.constant 0.000000e+00 : f32
    %22 = vector.broadcast %cst_26 : f32 to vector<8x16xf32>
    %23 = arith.cmpf ogt, %21, %22 : vector<8x16xf32>
    %cst_27 = arith.constant 0.000000e+00 : f32
    %24 = vector.broadcast %cst_27 : f32 to vector<8x16xf32>
    %25 = arith.minimumf %21, %24 : vector<8x16xf32>
    %26 = math.exp %25 : vector<8x16xf32>
    %cst_28 = arith.constant 1.000000e+00 : f32
    %27 = vector.broadcast %cst_28 : f32 to vector<8x16xf32>
    %28 = arith.subf %26, %27 : vector<8x16xf32>
    %29 = arith.select %23, %21, %28 : vector<8x16xi1>, vector<8x16xf32>
    %c16 = arith.constant 16 : index
    %c0_29 = arith.constant 0 : index
    %30 = vector.load %arg11[%c16, %c0_29] : memref<24x16xf32, #tpu.memory_space<vmem>>, vector<8x16xf32>
    tpu.vector_store %arg11[%c16, %c0_29], %29 {strides = array<i32>} : memref<24x16xf32, #tpu.memory_space<vmem>>, vector<8x16xf32>,
    %c0_30 = arith.constant 0 : index
    %c0_31 = arith.constant 0 : index
    %31 = vector.load %arg13[%c0_30, %c0_31] : memref<8x4xf32, #tpu.memory_space<vmem>>, vector<8x4xf32>
    %c0_32 = arith.constant 0 : index
    %c0_33 = arith.constant 0 : index
    %32 = vector.load %arg11[%c0_32, %c0_33] : memref<24x16xf32, #tpu.memory_space<vmem>>, vector<8x4xf32>
    tpu.vector_store %arg11[%c0_32, %c0_33], %31 {strides = array<i32>} : memref<24x16xf32, #tpu.memory_space<vmem>>, vector<8x4xf32>,
    %c16_34 = arith.constant 16 : index
    %c0_35 = arith.constant 0 : index
    %33 = vector.load %arg11[%c16_34, %c0_35] : memref<24x16xf32, #tpu.memory_space<vmem>>, vector<8x12xf32>
    %c0_36 = arith.constant 0 : index
    %c4_37 = arith.constant 4 : index
    %34 = vector.load %arg11[%c0_36, %c4_37] : memref<24x16xf32, #tpu.memory_space<vmem>>, vector<8x12xf32>
    tpu.vector_store %arg11[%c0_36, %c4_37], %33 {strides = array<i32>} : memref<24x16xf32, #tpu.memory_space<vmem>>, vector<8x12xf32>,
    %c0_38 = arith.constant 0 : index
    %c2_39 = arith.constant 2 : index
    %35 = vector.load %arg13[%c0_38, %c2_39] : memref<8x4xf32, #tpu.memory_space<vmem>>, vector<8x2xf32>
    %c8_40 = arith.constant 8 : index
    %c0_41 = arith.constant 0 : index
    %36 = vector.load %arg11[%c8_40, %c0_41] : memref<24x16xf32, #tpu.memory_space<vmem>>, vector<8x2xf32>
    tpu.vector_store %arg11[%c8_40, %c0_41], %35 {strides = array<i32>} : memref<24x16xf32, #tpu.memory_space<vmem>>, vector<8x2xf32>,
    %c16_42 = arith.constant 16 : index
    %c0_43 = arith.constant 0 : index
    %37 = vector.load %arg11[%c16_42, %c0_43] : memref<24x16xf32, #tpu.memory_space<vmem>>, vector<8x14xf32>
    %c8_44 = arith.constant 8 : index
    %c2_45 = arith.constant 2 : index
    %38 = vector.load %arg11[%c8_44, %c2_45] : memref<24x16xf32, #tpu.memory_space<vmem>>, vector<8x14xf32>
    tpu.vector_store %arg11[%c8_44, %c2_45], %37 {strides = array<i32>} : memref<24x16xf32, #tpu.memory_space<vmem>>, vector<8x14xf32>,
    %c0_46 = arith.constant 0 : index
    %c0_47 = arith.constant 0 : index
    %39 = vector.load %arg5[%c0_46, %c0_47] : memref<8x24xf32, #tpu.memory_space<vmem>>, vector<8x24xf32>
    %c0_48 = arith.constant 0 : index
    %c0_49 = arith.constant 0 : index
    %40 = vector.load %arg11[%c0_48, %c0_49] : memref<24x16xf32, #tpu.memory_space<vmem>>, vector<24x16xf32>
    %cst_50 = arith.constant dense<0.000000e+00> : vector<8x16xf32>
    %41 = tpu.matmul %39, %40, %cst_50 {dimension_numbers = #tpu.dot_dimension_numbers<[1], [0], [0], [1], [0, 0, 1, 1], [], []>} : vector<8x24xf32>, vector<24x16xf32>, vector<8x16xf32> -> vector<8x16xf32>
    %c0_51 = arith.constant 0 : index
    %c0_52 = arith.constant 0 : index
    %42 = vector.load %arg6[%c0_51, %c0_52] : memref<8x1xf32, #tpu.memory_space<vmem>>, vector<8x1xf32>
    %43 = vector.broadcast %42 : vector<8x1xf32> to vector<8x16xf32>
    %44 = arith.addf %41, %43 : vector<8x16xf32>
    %cst_53 = arith.constant 0.000000e+00 : f32
    %45 = vector.broadcast %cst_53 : f32 to vector<8x16xf32>
    %46 = arith.cmpf ogt, %44, %45 : vector<8x16xf32>
    %cst_54 = arith.constant 0.000000e+00 : f32
    %47 = vector.broadcast %cst_54 : f32 to vector<8x16xf32>
    %48 = arith.minimumf %44, %47 : vector<8x16xf32>
    %49 = math.exp %48 : vector<8x16xf32>
    %cst_55 = arith.constant 1.000000e+00 : f32
    %50 = vector.broadcast %cst_55 : f32 to vector<8x16xf32>
    %51 = arith.subf %49, %50 : vector<8x16xf32>
    %52 = arith.select %46, %44, %51 : vector<8x16xi1>, vector<8x16xf32>
    %c0_56 = arith.constant 0 : index
    %c0_57 = arith.constant 0 : index
    %53 = vector.load %arg7[%c0_56, %c0_57] : memref<8x4xf32, #tpu.memory_space<vmem>>, vector<8x4xf32>
    %c0_58 = arith.constant 0 : index
    %c0_59 = arith.constant 0 : index
    %c0_60 = arith.constant 0 : index
    %54 = vector.load %arg2[%c0_58, %c0_59, %c0_60] : memref<1x4x16xf32, #tpu.memory_space<vmem>>, vector<1x4x16xf32>
    %55 = vector.shape_cast %54 : vector<1x4x16xf32> to vector<4x16xf32>
    %cst_61 = arith.constant dense<0.000000e+00> : vector<8x16xf32>
    %56 = tpu.matmul %53, %55, %cst_61 {dimension_numbers = #tpu.dot_dimension_numbers<[1], [0], [0], [1], [0, 0, 1, 1], [], []>} : vector<8x4xf32>, vector<4x16xf32>, vector<8x16xf32> -> vector<8x16xf32>
    %c0_62 = arith.constant 0 : index
    %c0_63 = arith.constant 0 : index
    %57 = vector.load %arg8[%c0_62, %c0_63] : memref<8x1xf32, #tpu.memory_space<vmem>>, vector<8x1xf32>
    %58 = vector.broadcast %57 : vector<8x1xf32> to vector<8x16xf32>
    %59 = arith.addf %56, %58 : vector<8x16xf32>
    %60 = arith.addf %52, %59 : vector<8x16xf32>
    %cst_64 = arith.constant 0.000000e+00 : f32
    %61 = vector.broadcast %cst_64 : f32 to vector<8x16xf32>
    %62 = arith.cmpf ogt, %60, %61 : vector<8x16xf32>
    %cst_65 = arith.constant 0.000000e+00 : f32
    %63 = vector.broadcast %cst_65 : f32 to vector<8x16xf32>
    %64 = arith.minimumf %60, %63 : vector<8x16xf32>
    %65 = math.exp %64 : vector<8x16xf32>
    %cst_66 = arith.constant 1.000000e+00 : f32
    %66 = vector.broadcast %cst_66 : f32 to vector<8x16xf32>
    %67 = arith.subf %65, %66 : vector<8x16xf32>
    %68 = arith.select %62, %60, %67 : vector<8x16xi1>, vector<8x16xf32>
    %c0_67 = arith.constant 0 : index
    %c0_68 = arith.constant 0 : index
    %c0_69 = arith.constant 0 : index
    %69 = vector.load %arg9[%c0_67, %c0_68, %c0_69] : memref<1x8x16xf32, #tpu.memory_space<vmem>>, vector<1x8x16xf32>
    %70 = vector.shape_cast %69 : vector<1x8x16xf32> to vector<8x16xf32>
    %71 = vector.shape_cast %68 : vector<8x16xf32> to vector<1x8x16xf32>
    tpu.vector_store %arg9[%c0_67, %c0_68, %c0_69], %71 {strides = array<i32>} : memref<1x8x16xf32, #tpu.memory_space<vmem>>, vector<1x8x16xf32>,
    return
  }
  func.func @transform_0(%arg0: i32, %arg1: i32) -> (i32, i32, i32) {
    %c0_i32 = arith.constant 0 : i32
    %c0_i32_0 = arith.constant 0 : i32
    return %arg0, %c0_i32, %arg1 : i32, i32, i32
  }
  func.func @transform_1(%arg0: i32, %arg1: i32) -> (i32, i32) {
    %c0_i32 = arith.constant 0 : i32
    %c0_i32_0 = arith.constant 0 : i32
    %c0_i32_1 = arith.constant 0 : i32
    return %c0_i32, %c0_i32_0 : i32, i32
  }
  func.func @transform_2(%arg0: i32, %arg1: i32) -> (i32, i32) {
    %c0_i32 = arith.constant 0 : i32
    %c0_i32_0 = arith.constant 0 : i32
    %c0_i32_1 = arith.constant 0 : i32
    return %c0_i32, %c0_i32_0 : i32, i32
  }
  func.func @transform_3(%arg0: i32, %arg1: i32) -> (i32, i32) {
    %c0_i32 = arith.constant 0 : i32
    %c0_i32_0 = arith.constant 0 : i32
    %c0_i32_1 = arith.constant 0 : i32
    return %c0_i32, %c0_i32_0 : i32, i32
  }
  func.func @transform_4(%arg0: i32, %arg1: i32) -> (i32, i32) {
    %c0_i32 = arith.constant 0 : i32
    %c0_i32_0 = arith.constant 0 : i32
    %c0_i32_1 = arith.constant 0 : i32
    return %c0_i32, %c0_i32_0 : i32, i32
  }
  func.func @transform_5(%arg0: i32, %arg1: i32) -> (i32, i32) {
    %c0_i32 = arith.constant 0 : i32
    %c0_i32_0 = arith.constant 0 : i32
    %c0_i32_1 = arith.constant 0 : i32
    return %c0_i32, %c0_i32_0 : i32, i32
  }
  func.func @transform_6(%arg0: i32, %arg1: i32) -> (i32, i32) {
    %c0_i32 = arith.constant 0 : i32
    %c0_i32_0 = arith.constant 0 : i32
    %c0_i32_1 = arith.constant 0 : i32
    return %c0_i32, %c0_i32_0 : i32, i32
  }
  func.func @transform_7(%arg0: i32, %arg1: i32) -> (i32, i32, i32) {
    %c0_i32 = arith.constant 0 : i32
    %c0_i32_0 = arith.constant 0 : i32
    return %arg0, %c0_i32, %arg1 : i32, i32, i32
  }
}

module attributes {stable_mosaic.version = 11 : i64} {
  func.func @temporal_block_kernel(%arg0: i32, %arg1: i32, %arg2: memref<1x4x16xf32, #tpu.memory_space<vmem>>, %arg3: memref<8x12xf32, #tpu.memory_space<vmem>>, %arg4: memref<8x1xf32, #tpu.memory_space<vmem>>, %arg5: memref<8x24xf32, #tpu.memory_space<vmem>>, %arg6: memref<8x1xf32, #tpu.memory_space<vmem>>, %arg7: memref<8x4xf32, #tpu.memory_space<vmem>>, %arg8: memref<8x1xf32, #tpu.memory_space<vmem>>, %arg9: memref<1x8x16xf32, #tpu.memory_space<vmem>>, %arg10: memref<12x16xf32, #tpu.memory_space<vmem>>, %arg11: memref<24x16xf32, #tpu.memory_space<vmem>>, %arg12: memref<4x4xf32, #tpu.memory_space<vmem>>, %arg13: memref<8x4xf32, #tpu.memory_space<vmem>>) attributes {dimension_semantics = [#tpu.dimension_semantics<parallel>, #tpu.dimension_semantics<arbitrary>], iteration_bounds = array<i64: 2, 1>, scalar_prefetch = 0 : i64, scratch_operands = 4 : i64, tpu.core_type = #tpu.core_type<tc>, window_params = [{transform_indices = @transform_0, window_bounds = array<i64: 1, 4, 16>}, {pipeline_mode = #tpu.pipeline_mode<synchronous>, transform_indices = @transform_1, window_bounds = array<i64: 8, 12>}, {pipeline_mode = #tpu.pipeline_mode<synchronous>, transform_indices = @transform_2, window_bounds = array<i64: 8, 1>}, {pipeline_mode = #tpu.pipeline_mode<synchronous>, transform_indices = @transform_3, window_bounds = array<i64: 8, 24>}, {pipeline_mode = #tpu.pipeline_mode<synchronous>, transform_indices = @transform_4, window_bounds = array<i64: 8, 1>}, {pipeline_mode = #tpu.pipeline_mode<synchronous>, transform_indices = @transform_5, window_bounds = array<i64: 8, 4>}, {pipeline_mode = #tpu.pipeline_mode<synchronous>, transform_indices = @transform_6, window_bounds = array<i64: 8, 1>}, {transform_indices = @transform_7, window_bounds = array<i64: 1, 8, 16>}]} {
    %c0_i32 = arith.constant 0 : i32
    %0 = arith.cmpi eq, %arg1, %c0_i32 : i32
    %1 = arith.extui %0 : i1 to i32
    %c0_i32_0 = arith.constant 0 : i32
    %2 = arith.cmpi ne, %1, %c0_i32_0 : i32
    scf.if %2 {
      %cst_70 = arith.constant 0.000000e+00 : f32
      %72 = vector.broadcast %cst_70 : f32 to vector<4x4xf32>
      %c0_71 = arith.constant 0 : index
      %c0_72 = arith.constant 0 : index
      %73 = vector.load %arg12[%c0_71, %c0_72] : memref<4x4xf32, #tpu.memory_space<vmem>>, vector<4x4xf32>
      tpu.vector_store %arg12[%c0_71, %c0_72], %72 {strides = array<i32>} : memref<4x4xf32, #tpu.memory_space<vmem>>, vector<4x4xf32>,
      %cst_73 = arith.constant 0.000000e+00 : f32
      %74 = vector.broadcast %cst_73 : f32 to vector<8x4xf32>
      %c0_74 = arith.constant 0 : index
      %c0_75 = arith.constant 0 : index
      %75 = vector.load %arg13[%c0_74, %c0_75] : memref<8x4xf32, #tpu.memory_space<vmem>>, vector<8x4xf32>
      tpu.vector_store %arg13[%c0_74, %c0_75], %74 {strides = array<i32>} : memref<8x4xf32, #tpu.memory_space<vmem>>, vector<8x4xf32>,
    } else {
    }
    %c0 = arith.constant 0 : index
    %c0_1 = arith.constant 0 : index
    %3 = vector.load %arg12[%c0, %c0_1] : memref<4x4xf32, #tpu.memory_space<vmem>>, vector<4x4xf32>
    %c0_2 = arith.constant 0 : index
    %c0_3 = arith.constant 0 : index
    %4 = vector.load %arg10[%c0_2, %c0_3] : memref<12x16xf32, #tpu.memory_space<vmem>>, vector<4x4xf32>
    tpu.vector_store %arg10[%c0_2, %c0_3], %3 {strides = array<i32>} : memref<12x16xf32, #tpu.memory_space<vmem>>, vector<4x4xf32>,
    %c0_4 = arith.constant 0 : index
    %c0_5 = arith.constant 0 : index
    %c0_6 = arith.constant 0 : index
    %5 = vector.load %arg2[%c0_4, %c0_5, %c0_6] : memref<1x4x16xf32, #tpu.memory_space<vmem>>, vector<1x4x12xf32>
    %6 = vector.shape_cast %5 : vector<1x4x12xf32> to vector<4x12xf32>
    %c0_7 = arith.constant 0 : index
    %c4 = arith.constant 4 : index
    %7 = vector.load %arg10[%c0_7, %c4] : memref<12x16xf32, #tpu.memory_space<vmem>>, vector<4x12xf32>
    tpu.vector_store %arg10[%c0_7, %c4], %6 {strides = array<i32>} : memref<12x16xf32, #tpu.memory_space<vmem>>, vector<4x12xf32>,
    %c0_8 = arith.constant 0 : index
    %c2 = arith.constant 2 : index
    %8 = vector.load %arg12[%c0_8, %c2] : memref<4x4xf32, #tpu.memory_space<vmem>>, vector<4x2xf32>
    %c4_9 = arith.constant 4 : index
    %c0_10 = arith.constant 0 : index
    %9 = vector.load %arg10[%c4_9, %c0_10] : memref<12x16xf32, #tpu.memory_space<vmem>>, vector<4x2xf32>
    tpu.vector_store %arg10[%c4_9, %c0_10], %8 {strides = array<i32>} : memref<12x16xf32, #tpu.memory_space<vmem>>, vector<4x2xf32>,
    %c0_11 = arith.constant 0 : index
    %c0_12 = arith.constant 0 : index
    %c0_13 = arith.constant 0 : index
    %10 = vector.load %arg2[%c0_11, %c0_12, %c0_13] : memref<1x4x16xf32, #tpu.memory_space<vmem>>, vector<1x4x14xf32>
    %11 = vector.shape_cast %10 : vector<1x4x14xf32> to vector<4x14xf32>
    %c4_14 = arith.constant 4 : index
    %c2_15 = arith.constant 2 : index
    %12 = vector.load %arg10[%c4_14, %c2_15] : memref<12x16xf32, #tpu.memory_space<vmem>>, vector<4x14xf32>
    tpu.vector_store %arg10[%c4_14, %c2_15], %11 {strides = array<i32>} : memref<12x16xf32, #tpu.memory_space<vmem>>, vector<4x14xf32>,
    %c0_16 = arith.constant 0 : index
    %c0_17 = arith.constant 0 : index
    %c0_18 = arith.constant 0 : index
    %13 = vector.load %arg2[%c0_16, %c0_17, %c0_18] : memref<1x4x16xf32, #tpu.memory_space<vmem>>, vector<1x4x16xf32>
    %14 = vector.shape_cast %13 : vector<1x4x16xf32> to vector<4x16xf32>
    %c8 = arith.constant 8 : index
    %c0_19 = arith.constant 0 : index
    %15 = vector.load %arg10[%c8, %c0_19] : memref<12x16xf32, #tpu.memory_space<vmem>>, vector<4x16xf32>
    tpu.vector_store %arg10[%c8, %c0_19], %14 {strides = array<i32>} : memref<12x16xf32, #tpu.memory_space<vmem>>, vector<4x16xf32>,
    %c0_20 = arith.constant 0 : index
    %c0_21 = arith.constant 0 : index
    %16 = vector.load %arg3[%c0_20, %c0_21] : memref<8x12xf32, #tpu.memory_space<vmem>>, vector<8x12xf32>
    %c0_22 = arith.constant 0 : index
    %c0_23 = arith.constant 0 : index
    %17 = vector.load %arg10[%c0_22, %c0_23] : memref<12x16xf32, #tpu.memory_space<vmem>>, vector<12x16xf32>
    %cst = arith.constant dense<0.000000e+00> : vector<8x16xf32>
    %18 = tpu.matmul %16, %17, %cst {dimension_numbers = #tpu.dot_dimension_numbers<[1], [0], [0], [1], [0, 0, 1, 1], [], []>} : vector<8x12xf32>, vector<12x16xf32>, vector<8x16xf32> -> vector<8x16xf32>
    %c0_24 = arith.constant 0 : index
    %c0_25 = arith.constant 0 : index
    %19 = vector.load %arg4[%c0_24, %c0_25] : memref<8x1xf32, #tpu.memory_space<vmem>>, vector<8x1xf32>
    %20 = vector.broadcast %19 : vector<8x1xf32> to vector<8x16xf32>
    %21 = arith.addf %18, %20 : vector<8x16xf32>
    %cst_26 = arith.constant 0.000000e+00 : f32
    %22 = vector.broadcast %cst_26 : f32 to vector<8x16xf32>
    %23 = arith.cmpf ogt, %21, %22 : vector<8x16xf32>
    %cst_27 = arith.constant 0.000000e+00 : f32
    %24 = vector.broadcast %cst_27 : f32 to vector<8x16xf32>
    %25 = arith.minimumf %21, %24 : vector<8x16xf32>
    %26 = math.exp %25 : vector<8x16xf32>
    %cst_28 = arith.constant 1.000000e+00 : f32
    %27 = vector.broadcast %cst_28 : f32 to vector<8x16xf32>
    %28 = arith.subf %26, %27 : vector<8x16xf32>
    %29 = arith.select %23, %21, %28 : vector<8x16xi1>, vector<8x16xf32>
    %c16 = arith.constant 16 : index
    %c0_29 = arith.constant 0 : index
    %30 = vector.load %arg11[%c16, %c0_29] : memref<24x16xf32, #tpu.memory_space<vmem>>, vector<8x16xf32>
    tpu.vector_store %arg11[%c16, %c0_29], %29 {strides = array<i32>} : memref<24x16xf32, #tpu.memory_space<vmem>>, vector<8x16xf32>,
    %c0_30 = arith.constant 0 : index
    %c0_31 = arith.constant 0 : index
    %31 = vector.load %arg13[%c0_30, %c0_31] : memref<8x4xf32, #tpu.memory_space<vmem>>, vector<8x4xf32>
    %c0_32 = arith.constant 0 : index
    %c0_33 = arith.constant 0 : index
    %32 = vector.load %arg11[%c0_32, %c0_33] : memref<24x16xf32, #tpu.memory_space<vmem>>, vector<8x4xf32>
    tpu.vector_store %arg11[%c0_32, %c0_33], %31 {strides = array<i32>} : memref<24x16xf32, #tpu.memory_space<vmem>>, vector<8x4xf32>,
    %c16_34 = arith.constant 16 : index
    %c0_35 = arith.constant 0 : index
    %33 = vector.load %arg11[%c16_34, %c0_35] : memref<24x16xf32, #tpu.memory_space<vmem>>, vector<8x12xf32>
    %c0_36 = arith.constant 0 : index
    %c4_37 = arith.constant 4 : index
    %34 = vector.load %arg11[%c0_36, %c4_37] : memref<24x16xf32, #tpu.memory_space<vmem>>, vector<8x12xf32>
    tpu.vector_store %arg11[%c0_36, %c4_37], %33 {strides = array<i32>} : memref<24x16xf32, #tpu.memory_space<vmem>>, vector<8x12xf32>,
    %c0_38 = arith.constant 0 : index
    %c2_39 = arith.constant 2 : index
    %35 = vector.load %arg13[%c0_38, %c2_39] : memref<8x4xf32, #tpu.memory_space<vmem>>, vector<8x2xf32>
    %c8_40 = arith.constant 8 : index
    %c0_41 = arith.constant 0 : index
    %36 = vector.load %arg11[%c8_40, %c0_41] : memref<24x16xf32, #tpu.memory_space<vmem>>, vector<8x2xf32>
    tpu.vector_store %arg11[%c8_40, %c0_41], %35 {strides = array<i32>} : memref<24x16xf32, #tpu.memory_space<vmem>>, vector<8x2xf32>,
    %c16_42 = arith.constant 16 : index
    %c0_43 = arith.constant 0 : index
    %37 = vector.load %arg11[%c16_42, %c0_43] : memref<24x16xf32, #tpu.memory_space<vmem>>, vector<8x14xf32>
    %c8_44 = arith.constant 8 : index
    %c2_45 = arith.constant 2 : index
    %38 = vector.load %arg11[%c8_44, %c2_45] : memref<24x16xf32, #tpu.memory_space<vmem>>, vector<8x14xf32>
    tpu.vector_store %arg11[%c8_44, %c2_45], %37 {strides = array<i32>} : memref<24x16xf32, #tpu.memory_space<vmem>>, vector<8x14xf32>,
    %c0_46 = arith.constant 0 : index
    %c0_47 = arith.constant 0 : index
    %39 = vector.load %arg5[%c0_46, %c0_47] : memref<8x24xf32, #tpu.memory_space<vmem>>, vector<8x24xf32>
    %c0_48 = arith.constant 0 : index
    %c0_49 = arith.constant 0 : index
    %40 = vector.load %arg11[%c0_48, %c0_49] : memref<24x16xf32, #tpu.memory_space<vmem>>, vector<24x16xf32>
    %cst_50 = arith.constant dense<0.000000e+00> : vector<8x16xf32>
    %41 = tpu.matmul %39, %40, %cst_50 {dimension_numbers = #tpu.dot_dimension_numbers<[1], [0], [0], [1], [0, 0, 1, 1], [], []>} : vector<8x24xf32>, vector<24x16xf32>, vector<8x16xf32> -> vector<8x16xf32>
    %c0_51 = arith.constant 0 : index
    %c0_52 = arith.constant 0 : index
    %42 = vector.load %arg6[%c0_51, %c0_52] : memref<8x1xf32, #tpu.memory_space<vmem>>, vector<8x1xf32>
    %43 = vector.broadcast %42 : vector<8x1xf32> to vector<8x16xf32>
    %44 = arith.addf %41, %43 : vector<8x16xf32>
    %cst_53 = arith.constant 0.000000e+00 : f32
    %45 = vector.broadcast %cst_53 : f32 to vector<8x16xf32>
    %46 = arith.cmpf ogt, %44, %45 : vector<8x16xf32>
    %cst_54 = arith.constant 0.000000e+00 : f32
    %47 = vector.broadcast %cst_54 : f32 to vector<8x16xf32>
    %48 = arith.minimumf %44, %47 : vector<8x16xf32>
    %49 = math.exp %48 : vector<8x16xf32>
    %cst_55 = arith.constant 1.000000e+00 : f32
    %50 = vector.broadcast %cst_55 : f32 to vector<8x16xf32>
    %51 = arith.subf %49, %50 : vector<8x16xf32>
    %52 = arith.select %46, %44, %51 : vector<8x16xi1>, vector<8x16xf32>
    %c0_56 = arith.constant 0 : index
    %c0_57 = arith.constant 0 : index
    %53 = vector.load %arg7[%c0_56, %c0_57] : memref<8x4xf32, #tpu.memory_space<vmem>>, vector<8x4xf32>
    %c0_58 = arith.constant 0 : index
    %c0_59 = arith.constant 0 : index
    %c0_60 = arith.constant 0 : index
    %54 = vector.load %arg2[%c0_58, %c0_59, %c0_60] : memref<1x4x16xf32, #tpu.memory_space<vmem>>, vector<1x4x16xf32>
    %55 = vector.shape_cast %54 : vector<1x4x16xf32> to vector<4x16xf32>
    %cst_61 = arith.constant dense<0.000000e+00> : vector<8x16xf32>
    %56 = tpu.matmul %53, %55, %cst_61 {dimension_numbers = #tpu.dot_dimension_numbers<[1], [0], [0], [1], [0, 0, 1, 1], [], []>} : vector<8x4xf32>, vector<4x16xf32>, vector<8x16xf32> -> vector<8x16xf32>
    %c0_62 = arith.constant 0 : index
    %c0_63 = arith.constant 0 : index
    %57 = vector.load %arg8[%c0_62, %c0_63] : memref<8x1xf32, #tpu.memory_space<vmem>>, vector<8x1xf32>
    %58 = vector.broadcast %57 : vector<8x1xf32> to vector<8x16xf32>
    %59 = arith.addf %56, %58 : vector<8x16xf32>
    %60 = arith.addf %52, %59 : vector<8x16xf32>
    %cst_64 = arith.constant 0.000000e+00 : f32
    %61 = vector.broadcast %cst_64 : f32 to vector<8x16xf32>
    %62 = arith.cmpf ogt, %60, %61 : vector<8x16xf32>
    %cst_65 = arith.constant 0.000000e+00 : f32
    %63 = vector.broadcast %cst_65 : f32 to vector<8x16xf32>
    %64 = arith.minimumf %60, %63 : vector<8x16xf32>
    %65 = math.exp %64 : vector<8x16xf32>
    %cst_66 = arith.constant 1.000000e+00 : f32
    %66 = vector.broadcast %cst_66 : f32 to vector<8x16xf32>
    %67 = arith.subf %65, %66 : vector<8x16xf32>
    %68 = arith.select %62, %60, %67 : vector<8x16xi1>, vector<8x16xf32>
    %c0_67 = arith.constant 0 : index
    %c0_68 = arith.constant 0 : index
    %c0_69 = arith.constant 0 : index
    %69 = vector.load %arg9[%c0_67, %c0_68, %c0_69] : memref<1x8x16xf32, #tpu.memory_space<vmem>>, vector<1x8x16xf32>
    %70 = vector.shape_cast %69 : vector<1x8x16xf32> to vector<8x16xf32>
    %71 = vector.shape_cast %68 : vector<8x16xf32> to vector<1x8x16xf32>
    tpu.vector_store %arg9[%c0_67, %c0_68, %c0_69], %71 {strides = array<i32>} : memref<1x8x16xf32, #tpu.memory_space<vmem>>, vector<1x8x16xf32>,
    return
  }
  func.func @transform_0(%arg0: i32, %arg1: i32) -> (i32, i32, i32) {
    %c0_i32 = arith.constant 0 : i32
    %c0_i32_0 = arith.constant 0 : i32
    return %arg0, %c0_i32, %arg1 : i32, i32, i32
  }
  func.func @transform_1(%arg0: i32, %arg1: i32) -> (i32, i32) {
    %c0_i32 = arith.constant 0 : i32
    %c0_i32_0 = arith.constant 0 : i32
    %c0_i32_1 = arith.constant 0 : i32
    return %c0_i32, %c0_i32_0 : i32, i32
  }
  func.func @transform_2(%arg0: i32, %arg1: i32) -> (i32, i32) {
    %c0_i32 = arith.constant 0 : i32
    %c0_i32_0 = arith.constant 0 : i32
    %c0_i32_1 = arith.constant 0 : i32
    return %c0_i32, %c0_i32_0 : i32, i32
  }
  func.func @transform_3(%arg0: i32, %arg1: i32) -> (i32, i32) {
    %c0_i32 = arith.constant 0 : i32
    %c0_i32_0 = arith.constant 0 : i32
    %c0_i32_1 = arith.constant 0 : i32
    return %c0_i32, %c0_i32_0 : i32, i32
  }
  func.func @transform_4(%arg0: i32, %arg1: i32) -> (i32, i32) {
    %c0_i32 = arith.constant 0 : i32
    %c0_i32_0 = arith.constant 0 : i32
    %c0_i32_1 = arith.constant 0 : i32
    return %c0_i32, %c0_i32_0 : i32, i32
  }
  func.func @transform_5(%arg0: i32, %arg1: i32) -> (i32, i32) {
    %c0_i32 = arith.constant 0 : i32
    %c0_i32_0 = arith.constant 0 : i32
    %c0_i32_1 = arith.constant 0 : i32
    return %c0_i32, %c0_i32_0 : i32, i32
  }
  func.func @transform_6(%arg0: i32, %arg1: i32) -> (i32, i32) {
    %c0_i32 = arith.constant 0 : i32
    %c0_i32_0 = arith.constant 0 : i32
    %c0_i32_1 = arith.constant 0 : i32
    return %c0_i32, %c0_i32_0 : i32, i32
  }
  func.func @transform_7(%arg0: i32, %arg1: i32) -> (i32, i32, i32) {
    %c0_i32 = arith.constant 0 : i32
    %c0_i32_0 = arith.constant 0 : i32
    return %arg0, %c0_i32, %arg1 : i32, i32, i32
  }
}

</mosaic_0001>

<bundles_post_ra>
// kernel: tpu_custom_call.1
= control target key start
LH: loop header
LB: loop body
LE: loop exit
PB: predicated region body
PF: predicated region fallthrough
CT: control target
= control target key end

     0   :  { %12 = vsyncpa [#allocation7], 0  ;;  %s1138_s0 = inlined_call_operand.vmem [shape: f32[2,4,16], index: 0, kind: input, shape index: {}]   ;;  %s1139_s1 = inlined_call_operand.vmem [shape: f32[8,12], index: 1, kind: input, shape index: {}]   ;;  %s1140_s2 = inlined_call_operand.vmem [shape: f32[8,1], index: 2, kind: input, shape index: {}]   ;;  %s1141_s3 = inlined_call_operand.vmem [shape: f32[8,24], index: 3, kind: input, shape index: {}]   ;;  %s1142_s4 = inlined_call_operand.vmem [shape: f32[8,1], index: 4, kind: input, shape index: {}]   ;;  %s1143_s5 = inlined_call_operand.vmem [shape: f32[8,4], index: 5, kind: input, shape index: {}]   ;;  %s1144_s6 = inlined_call_operand.vmem [shape: f32[8,1], index: 6, kind: input, shape index: {}]   ;;  %s1145_s7 = inlined_call_operand.hbm [shape: f32[2,8,16], index: 7, kind: output, shape index: {}]  }
   0x1   :  { %14 = vsyncpa [#allocation7 + $0x1], 0  ;;  %s977_s24 = smov 0   ;;  %s979_s25 = smov 0  }
   0x2   :  { %s981_s26 = smov 0   ;;  %s983_s27 = smov 0  }
   0x3   :  { %s985_s28 = smov 0   ;;  %s987_s29 = smov 0  }
   0x4 LB: > { %s721_s30 = sadd.s32 4294967295, %s926_s29   ;;  %s722_s8 = sadd.s32 4294967294, %s926_s29   ;;  %s926_s29 = sphi %s987_s29, %s20_s29   ;;  %s922_s28 = sphi %s985_s28, %s1152_s28   ;;  %s918_s27 = sphi %s983_s27, %s1151_s27   ;;  %s914_s26 = sphi %s981_s26, %s1150_s26   ;;  %s910_s25 = sphi %s979_s25, %s1149_s25   ;;  %s906_s24 = sphi %s977_s24, %s1148_s24  }
   0x5   : > { %s32_s9 = sadd.s32 1, %s922_s28  ;;  %s195_s10 = sadd.s32 1, %s914_s26 }
   0x6   : > { %p34_p0 = scmp.ge.s32.totalorder %s32_s9, 2  ;;  %p205_p1 = scmp.ne.s32.totalorder %s914_s26, %s910_s25 }
   0x7   : > { %p206_p2 = scmp.eq.s32.totalorder %s721_s30, 1  ;;  %p211_p3 = scmp.ne.s32.totalorder %s910_s25, %s906_s24 }
   0x8   : > { %s1154_s9 = smov (%p34_p0, %s32_s9), 0  ;;  %p212_p5 = scmp.eq.s32.totalorder %s722_s8, 1 }
   0x9   : > { %p1017_p4 = por %p206_p2, %p205_p1  ;;  %s190_s12 = ssub.s32 %s922_s28, %s1154_s9 }
   0xa   : > { %p725_p6 = scmp.ge.s32.totalorder %s926_s29, 1  ;;  %p193_p7 = scmp.eq.s32.totalorder %s190_s12, 0 }
   0xb   : > { %p1024_p8 = por %p212_p5, %p211_p3  ;;  %p258_p9 = scmp.lt.s32.totalorder %s926_s29, 3 }
   0xc   : > { %s1030_s14 = scalar_select %p193_p7, %s914_s26, %s195_s10  }
   0xd   : > { %p259_p10 = pnand %p725_p6, %p258_p9 }
   0xe   : > { %vm303_vm0 = vcmask (!%p259_p10), 27648   ;;  %p292_p11 = scmp.lt.s32.totalorder (!%p259_p10), %s918_s27, 1  ;;  %v928_v0 = vmov (!%p259_p10), 0.0   ;;  %v929_v1 = vmov (!%p259_p10), 0.0|0.0   ;;  %vm332_vm1 = vcmask (!%p259_p10), 125952   ;;  %s930_s20 = smov (!%p259_p10), 2  }
   0xf   : > { %262 = sbr.rel (%p259_p10) target bundleno = 794 (0x31a), region = 48  ;;  %304 = vst.msk [vmem:[#allocation4] sm:$0xf] (!%p259_p10), %vm303_vm0, %v928_v0  ;;  %770 = vmatprep.subr.bf16.mxu0 (!%p259_p10), %v929_v1  ;;  %774 = vmatprep.subr.bf16.mxu1 (!%p259_p10), %v929_v1  ;;  %s931_s21 = smov (!%p259_p10), 126   ;;  %vm932_vm2 = vmmov (!%p259_p10), 0   ;;  %v337_v7 = vld [vmem:[%s1140_s2] sm:$0xff] (!%p259_p10) }
  0x10   : > { %753 = vmatprep.mubr.msk.f32.mxu0 (!%p259_p10), %vm932_vm2, %v928_v0  ;;  %762 = vmatprep.mubr.msk.f32.mxu1 (!%p259_p10), %vm932_vm2, %v928_v0  ;;  %s933_s22 = smov (!%p259_p10), 4   ;;  %v934_v8 = vmov (!%p259_p10), 0   ;;  %vm322_vm3 = vcmask (!%p259_p10), 11264   ;;  %vm329_vm4 = vcmask (!%p259_p10), 125968   ;;  %vm315_vm5 = vcmask (!%p259_p10), 125984   ;;  %v334_v15 = vld [vmem:[%s1139_s1] sm:$0xff] (!%p259_p10) }
  0x11   : > { %840 = vset.pattern.permute.xlu1 (!%p259_p10), %v934_v8  ;;  %841 = vset.pattern.permute.xlu0 (!%p259_p10), %v934_v8  ;;  %vm347_vm6 = vcmask (!%p259_p10), 1043456   ;;  %vm935_vm7 = vmmov (!%p259_p10), 1   ;;  %vm343_vm9 = vcmask (!%p259_p10), 97280   ;;  %vm305_vm10 = vcmask (!%p259_p10), 31744   ;;  %v457_v28 = vld [vmem:[%s1142_s4] sm:$0xff] (!%p259_p10)  ;;  %s737_s30 = sshll.u32 (!%p259_p10), %s918_s27, 7 }
  0x12   : > { %vm772_vm8 = vmpackc.low (!%p259_p10), %vm347_vm6, %vm935_vm7  ;;  %306 = vst.msk [vmem:[#allocation5] sm:$0xff] (!%p259_p10), %vm305_vm10, %v928_v0  ;;  %vm444_vm11 = vcmask (!%p259_p10), 15360   ;;  %vm427_vm12 = vcmask (!%p259_p10), 130048   ;;  %v543_v30 = vld [vmem:[%s1143_s5] sm:$0xff] (!%p259_p10)  ;;  %vm437_vm14 = vcmask (!%p259_p10), 130080   ;;  %vm451_vm15 = vcmask (!%p259_p10), 130064  }
  0x13   : > { %v545_v31 = vld [vmem:[%s1144_s6] sm:$0xff] (!%p259_p10)  ;;  %s936_s18 = smov (!%p259_p10), [#allocation6]  }
  0x14   : > { %v453_v37 = vld [vmem:[%s1141_s3] sm:$0xff] (!%p259_p10) }
  0x16   : > { %s293_s15 = scalar_select %p292_p11, %s918_s27, 1  ;;  %v317_v4 = vld [vmem:[#allocation4] sm:$0xf] }
  0x17   : > { %v307_v5 = vld [vmem:[#allocation4] sm:$0xf]  ;;  %319 = vrot.lane.b32.xlu0 %v317_v4, %s931_s21 }
  0x18   : > { %s727_s16 = sshll.u32 %s293_s15, 2  ;;  %309 = vst.msk [vmem:[#allocation2] sm:$0xf] %vm303_vm0, %v307_v5  ;;  %vm463_vm0 = vcmask 195584  }
  0x19   : > { %s1039_s19 = scalar_lea.vmem %s1138_s0, %s727_s16  ;;  %v439_v16 = vld [vmem:[#allocation5] sm:$0xff]  ;;  %s1090_s16 = scalar_lea.hbm %s1145_s7, %s737_s30 }
  0x1a   : > { %v324_v2 = vld [vmem:[%s1039_s19] sm:$0xf]  ;;  %431 = vst.msk [vmem:[#allocation3] sm:$0xff] %vm305_vm10, %v439_v16 }
  0x1b   : > { %v331_v3 = vld [vmem:[%s1039_s19] sm:$0xf]  ;;  %326 = vrot.lane.b32.xlu1 %v324_v2, %s930_s20 }
  0x1c   : > { %333 = vst.msk [vmem:[#allocation2 + $0x8] sm:$0xf] %vm332_vm1, %v331_v3  ;;  %v310_v6 = vld [vmem:[%s1039_s19] sm:$0xf] }
  0x1d   : > { %312 = vrot.lane.b32.xlu0 %v310_v6, %s933_s22  ;;  %v544_v29 = vld [vmem:[%s1039_s19] sm:$0xf] }
  0x1f   : > { %340 = vperm.xlu1 %840, %v337_v7  }
  0x21   : > { %441 = vrot.lane.b32.xlu0 %v439_v16, %s931_s21  ;;  %s852_s21 = sshll.u32 %s936_s18, 4  ;;  %s853_s21 = int_to_ptr.vmem [resolvable:$false] %s852_s21 }
  0x22   : > { %s854_s19 = scalar_lea.vmem %s853_s21, 256 }
  0x23   : > { %v336_v12 = vld [vmem:[#allocation2 + $0x8] sm:$0xf] }
  0x89   : > { %v320_v10 = vpop.permute.xlu0 %319 }
  0x8a   : > { %323 = vst.msk [vmem:[#allocation2 + $0x4] sm:$0xf] %vm322_vm3, %v320_v10 }
  0x8d   : > { %v327_v9 = vpop.permute.xlu1 %326 }
  0x8e   : > { %330 = vst.msk [vmem:[#allocation2 + $0x4] sm:$0xf] %vm329_vm4, %v327_v9 }
  0x8f   : > { %v313_v11 = vpop.permute.xlu0 %312 }
  0x90   : > { %316 = vst.msk [vmem:[#allocation2] sm:$0xf] %vm315_vm5, %v313_v11 }
  0x93   : > { %v442_v23 = vpop.permute.xlu0 %441 }
  0x94   : > { %445 = vst.msk [vmem:[#allocation3 + $0x8] sm:$0xff] %vm444_vm11, %v442_v23 }
  0x97   : > { %v335_v13 = vld [vmem:[#allocation2] sm:$0xff] }
  0x98   : > { %v771_v14 = vpack.c.bf16 %v336_v12, %v335_v13 }
  0x9a   : > { %773 = vmatpush3.bf16.msk.msra.mxu0 %vm772_vm8, %v771_v14 }
  0x9b   : > { %765 = vmatprep.subr.mxu0 %v928_v0 }
  0x9d   : > { %754 = vmatmul.mubr.msk.f32.vlgmr.msra.gmra.mrb[0].mxu0 %vm343_vm9, %v334_v15 }
  0x9e   : > { %767 = vmatprep.mubr.msk.f32.mxu0 %vm932_vm2, %v928_v0  ;;  %v341_v17 = vpop.permute.xlu1 %340  ;;  %766 = vmatpush3.msk.msra.mxu0 %vm347_vm6, %v544_v29 }
  0xa1   : > { %768 = vmatmul.mubr.msk.f32.vlgmr.msra.gmra.mrb[2].mxu0 %vm305_vm10, %v543_v30 }
 0x170   : > { %v417_v18 = vpop.f32.mrb[0].mxu0 }
 0x171   : > { %v418_v19 = vadd.f32 %v417_v18, %v341_v17  ;;  %v755_v20 = vpop.f32.mrb[1].mxu0 }
 0x173   : > { %v422_v21 = vmin.f32 %v418_v19, 0.0  ;;  %vm421_vm13 = vcmp.gt.f32.partialorder %v418_v19, 0.0 }
 0x174   : > { %v623_v38 = vpop.f32.mrb[2].mxu0 }
 0x175   : > { %v423_v22 = vmul.f32 1.442695, %v422_v21  ;;  %v769_v39 = vpop.f32.mrb[3].mxu0 }
 0x177   : > { %842 = vpow2.f32 %v423_v22 }
 0x181   : > { %v843_v24 = vpop.eup %842 }
 0x182   : > { %v730_v25 = vadd.f32 -1.0, %v843_v24 }
 0x184   : > { %v426_v26 = vsel %vm421_vm13, %v418_v19, %v730_v25 }
 0x185   : > { %428 = vst.msk [vmem:[#allocation3 + $0x10] sm:$0xff] %vm427_vm12, %v426_v26 }
 0x18c   : > { %v446_v27 = vld [vmem:[#allocation3 + $0x10] sm:$0xff] }
 0x18d   : > { %448 = vrot.lane.b32.xlu0 %v446_v27, %s930_s20  ;;  %434 = vrot.lane.b32.xlu1 %v446_v27, %s933_s22  ;;  %s289_s22 = sand.u32 1, %s910_s25  }
 0x18e   : > { %s726_s23 = sshll.u32 %s289_s22, 3  ;;  %s636_s17 = scalar_lea.sflag [#allocation7], %s289_s22 }
 0x18f   : > { %s291_s8 = scalar_lea.vmem [#allocation6], %s726_s23 }
 0x190   : > { %s650_s10 = sshll.u32 %s291_s8, 4  ;;  %s1092_s10 = int_to_ptr.vmem [resolvable:$true] %s650_s10 }
 0x191   : > { %460 = vperm.xlu1 %840, %v457_v28   ;;  %548 = vperm.xlu0 %841, %v545_v31   ;;  %s848_s27 = scalar_lea.vmem %s1092_s10, 128  ;;  %p855_p1 = scmp.lt.s32.totalorder %s1092_s10, %s853_s21 }
 0x192   : > { %p849_p12 = scmp.ne.s32.totalorder %s1092_s10, %s848_s27  ;;  %p856_p2 = scmp.lt.s32.totalorder %s854_s19, %s848_s27 }
 0x194   : > { %p850_p13 = pnand %p849_p12, %p1017_p4  ;;  %p857_p3 = por %p856_p2, %p855_p1 }
 0x196   : > { %p851_p0 = pneg %p850_p13 }
 0x198   : > { %p858_p5 = pnand %p857_p3, %p851_p0 }
 0x1ff   : > { %v435_v32 = vpop.permute.xlu1 %434  ;;  %v449_v33 = vpop.permute.xlu0 %448 }
 0x200   : > { %438 = vst.msk [vmem:[#allocation3] sm:$0xff] %vm437_vm14, %v435_v32 }
 0x201   : > { %452 = vst.msk [vmem:[#allocation3 + $0x8] sm:$0xff] %vm451_vm15, %v449_v33 }
 0x207   : > { %v454_v34 = vld [vmem:[#allocation3] sm:$0xff] }
 0x208   : > { %v455_v35 = vld [vmem:[#allocation3 + $0x8] sm:$0xff] }
 0x209   : > { %v775_v36 = vpack.c.bf16 %v455_v35, %v454_v34 }
 0x20b   : > { %776 = vmatpush3.bf16.msra.mxu1 %v775_v36 }
 0x20c   : > { %760 = vmatprep.subr.mxu1 %v928_v0 }
 0x20f   : > { %761 = vmatpush3.msra.mxu1 %v446_v27 }
 0x210   : > { %763 = vmatmul.mubr.msk.f32.vlgmr.msra.gmra.mrb[0].mxu1 %vm463_vm0, %v453_v37  ;;  %v461_v40 = vpop.permute.xlu1 %460  ;;  %v549_v46 = vpop.permute.xlu0 %548 }
 0x211   : > { %v624_v48 = vadd.f32 %v623_v38, %v549_v46 }
 0x2e3   : > { %v533_v41 = vpop.f32.mrb[0].mxu1 }
 0x2e4   : > { %v534_v42 = vadd.f32 %v533_v41, %v461_v40  ;;  %v764_v43 = vpop.f32.mrb[1].mxu1 }
 0x2e6   : > { %v538_v44 = vmin.f32 %v534_v42, 0.0  ;;  %vm537_vm1 = vcmp.gt.f32.partialorder %v534_v42, 0.0 }
 0x2e8   : > { %v539_v45 = vmul.f32 1.442695, %v538_v44 }
 0x2ea   : > { %844 = vpow2.f32 %v539_v45 }
 0x2f4   : > { %v845_v47 = vpop.eup %844 }
 0x2f5   : > { %v732_v49 = vadd.f32 -1.0, %v845_v47 }
 0x2f7   : > { %v542_v50 = vsel %vm537_vm1, %v534_v42, %v732_v49 }
 0x2f8   : > { %v627_v51 = vadd.f32 %v624_v48, %v542_v50 }
 0x2fa   : > { %v629_v52 = vmin.f32 %v627_v51, 0.0  ;;  %vm628_vm2 = vcmp.gt.f32.partialorder %v627_v51, 0.0 }
 0x2fc   : > { %v630_v53 = vmul.f32 1.442695, %v629_v52 }
 0x2fe   : > { %846 = vpow2.f32 %v630_v53 }
 0x308   : > { %v847_v54 = vpop.eup %846 }
 0x309   : > { %v735_v55 = vadd.f32 -1.0, %v847_v54 }
 0x30b   : > { %v633_v56 = vsel %vm628_vm2, %v627_v51, %v735_v55 }
 0x30c   : > { %634 = vst.msk [vmem:[%s291_s8] sm:$0xff] %vm427_vm12, %v633_v56 }
 0x30d   : > { %861 = shalt.err (!%p858_p5)
}
 0x30e   : > { %s862_s20 = scalar_lea.hbm %s1090_s16, 128  ;;  %s866_s30 = scalar_lea.hbm %s1145_s7, 256 }
 0x30f   : > { %p863_p6 = scmp.ne.s32.totalorder %s1090_s16, %s862_s20  ;;  %p867_p10 = scmp.lt.u32.totalorder %s1090_s16, %s1145_s7 }
 0x310   : > { %p868_p11 = scmp.lt.u32.totalorder %s866_s30, %s862_s20  ;;  %p870_p13 = scmp.lt.u32.totalorder %s862_s20, %s1090_s16 }
 0x311   : > { %p864_p7 = pnand %p863_p6, %p1017_p4 }
 0x312   : > { %p869_p12 = por %p868_p11, %p867_p10 }
 0x313   : > { %p865_p9 = pneg %p864_p7 }
 0x314   : > { %p871_p0 = por %p870_p13, %p869_p12 }
 0x316   : > { %p872_p1 = pnand %p871_p0, %p865_p9 }
 0x318   : > { %875 = shalt.err (!%p872_p1)
}
 0x319   : > { %777 = dma.vmem_to_hbm [thread:$0]  (%p1017_p4), %s1092_s10, 128, %s1090_s16, %s636_s17  }
 0x31a PF: > { %p783_p2 = scmp.ge.s32.totalorder %s926_s29, 2  ;;  %s662_s15 = sand.u32 1, %s906_s24  }
 0x31b   : > { %s663_s27 = scalar_lea.sflag [#allocation7], %s662_s15 }
 0x31c   : > { %p780_p3 = pnand %p783_p2, %p1024_p8 }
 0x31e   : > { %901 = dma.done.wait (!%p780_p3), %s663_s27, 128  }
 0x31f   : > { %903 = vsyncadd (!%p780_p3), %s663_s27, 4294967168  ;;  %s20_s29 = sadd.s32 1, %s926_s29   ;;  %s1148_s24 = smov %s910_s25 }
 0x320   : > { %p17_p5 = scmp.ge.s32.totalorder %s20_s29, 4   ;;  %s1149_s25 = smov %s914_s26 }
 0x321   : > { %s1150_s26 = smov %s1030_s14  ;;  %s1151_s27 = smov %s922_s28 }
 0x322   : > { %s1152_s28 = smov %s1154_s9  ;;  %19 = sbr.rel (!%p17_p5) target bundleno = 4 (0x4), region = 87 }
 0x329   :  { %668 = vsyncpa [#allocation7], 1 }
 0x32a   :  { %670 = vsyncpa [#allocation7 + $0x1], 1 }

// kernel: tpu_custom_call.1
= control target key start
LH: loop header
LB: loop body
LE: loop exit
PB: predicated region body
PF: predicated region fallthrough
CT: control target
= control target key end

     0   :  { %12 = vsyncpa [#allocation7], 0  ;;  %s1138_s0 = inlined_call_operand.vmem [shape: f32[2,4,16], index: 0, kind: input, shape index: {}]   ;;  %s1139_s1 = inlined_call_operand.vmem [shape: f32[8,12], index: 1, kind: input, shape index: {}]   ;;  %s1140_s2 = inlined_call_operand.vmem [shape: f32[8,1], index: 2, kind: input, shape index: {}]   ;;  %s1141_s3 = inlined_call_operand.vmem [shape: f32[8,24], index: 3, kind: input, shape index: {}]   ;;  %s1142_s4 = inlined_call_operand.vmem [shape: f32[8,1], index: 4, kind: input, shape index: {}]   ;;  %s1143_s5 = inlined_call_operand.vmem [shape: f32[8,4], index: 5, kind: input, shape index: {}]   ;;  %s1144_s6 = inlined_call_operand.vmem [shape: f32[8,1], index: 6, kind: input, shape index: {}]   ;;  %s1145_s7 = inlined_call_operand.hbm [shape: f32[2,8,16], index: 7, kind: output, shape index: {}]  }
   0x1   :  { %14 = vsyncpa [#allocation7 + $0x1], 0  ;;  %s977_s24 = smov 0   ;;  %s979_s25 = smov 0  }
   0x2   :  { %s981_s26 = smov 0   ;;  %s983_s27 = smov 0  }
   0x3   :  { %s985_s28 = smov 0   ;;  %s987_s29 = smov 0  }
   0x4 LB: > { %s721_s30 = sadd.s32 4294967295, %s926_s29   ;;  %s722_s8 = sadd.s32 4294967294, %s926_s29   ;;  %s926_s29 = sphi %s987_s29, %s20_s29   ;;  %s922_s28 = sphi %s985_s28, %s1152_s28   ;;  %s918_s27 = sphi %s983_s27, %s1151_s27   ;;  %s914_s26 = sphi %s981_s26, %s1150_s26   ;;  %s910_s25 = sphi %s979_s25, %s1149_s25   ;;  %s906_s24 = sphi %s977_s24, %s1148_s24  }
   0x5   : > { %s32_s9 = sadd.s32 1, %s922_s28  ;;  %s195_s10 = sadd.s32 1, %s914_s26 }
   0x6   : > { %p34_p0 = scmp.ge.s32.totalorder %s32_s9, 2  ;;  %p205_p1 = scmp.ne.s32.totalorder %s914_s26, %s910_s25 }
   0x7   : > { %p206_p2 = scmp.eq.s32.totalorder %s721_s30, 1  ;;  %p211_p3 = scmp.ne.s32.totalorder %s910_s25, %s906_s24 }
   0x8   : > { %s1154_s9 = smov (%p34_p0, %s32_s9), 0  ;;  %p212_p5 = scmp.eq.s32.totalorder %s722_s8, 1 }
   0x9   : > { %p1017_p4 = por %p206_p2, %p205_p1  ;;  %s190_s12 = ssub.s32 %s922_s28, %s1154_s9 }
   0xa   : > { %p725_p6 = scmp.ge.s32.totalorder %s926_s29, 1  ;;  %p193_p7 = scmp.eq.s32.totalorder %s190_s12, 0 }
   0xb   : > { %p1024_p8 = por %p212_p5, %p211_p3  ;;  %p258_p9 = scmp.lt.s32.totalorder %s926_s29, 3 }
   0xc   : > { %s1030_s14 = scalar_select %p193_p7, %s914_s26, %s195_s10  }
   0xd   : > { %p259_p10 = pnand %p725_p6, %p258_p9 }
   0xe   : > { %vm303_vm0 = vcmask (!%p259_p10), 27648   ;;  %p292_p11 = scmp.lt.s32.totalorder (!%p259_p10), %s918_s27, 1  ;;  %v928_v0 = vmov (!%p259_p10), 0.0   ;;  %v929_v1 = vmov (!%p259_p10), 0.0|0.0   ;;  %vm332_vm1 = vcmask (!%p259_p10), 125952   ;;  %s930_s20 = smov (!%p259_p10), 2  }
   0xf   : > { %262 = sbr.rel (%p259_p10) target bundleno = 794 (0x31a), region = 48  ;;  %304 = vst.msk [vmem:[#allocation4] sm:$0xf] (!%p259_p10), %vm303_vm0, %v928_v0  ;;  %770 = vmatprep.subr.bf16.mxu0 (!%p259_p10), %v929_v1  ;;  %774 = vmatprep.subr.bf16.mxu1 (!%p259_p10), %v929_v1  ;;  %s931_s21 = smov (!%p259_p10), 126   ;;  %vm932_vm2 = vmmov (!%p259_p10), 0   ;;  %v337_v7 = vld [vmem:[%s1140_s2] sm:$0xff] (!%p259_p10) }
  0x10   : > { %753 = vmatprep.mubr.msk.f32.mxu0 (!%p259_p10), %vm932_vm2, %v928_v0  ;;  %762 = vmatprep.mubr.msk.f32.mxu1 (!%p259_p10), %vm932_vm2, %v928_v0  ;;  %s933_s22 = smov (!%p259_p10), 4   ;;  %v934_v8 = vmov (!%p259_p10), 0   ;;  %vm322_vm3 = vcmask (!%p259_p10), 11264   ;;  %vm329_vm4 = vcmask (!%p259_p10), 125968   ;;  %vm315_vm5 = vcmask (!%p259_p10), 125984   ;;  %v334_v15 = vld [vmem:[%s1139_s1] sm:$0xff] (!%p259_p10) }
  0x11   : > { %840 = vset.pattern.permute.xlu1 (!%p259_p10), %v934_v8  ;;  %841 = vset.pattern.permute.xlu0 (!%p259_p10), %v934_v8  ;;  %vm347_vm6 = vcmask (!%p259_p10), 1043456   ;;  %vm935_vm7 = vmmov (!%p259_p10), 1   ;;  %vm343_vm9 = vcmask (!%p259_p10), 97280   ;;  %vm305_vm10 = vcmask (!%p259_p10), 31744   ;;  %v457_v28 = vld [vmem:[%s1142_s4] sm:$0xff] (!%p259_p10)  ;;  %s737_s30 = sshll.u32 (!%p259_p10), %s918_s27, 7 }
  0x12   : > { %vm772_vm8 = vmpackc.low (!%p259_p10), %vm347_vm6, %vm935_vm7  ;;  %306 = vst.msk [vmem:[#allocation5] sm:$0xff] (!%p259_p10), %vm305_vm10, %v928_v0  ;;  %vm444_vm11 = vcmask (!%p259_p10), 15360   ;;  %vm427_vm12 = vcmask (!%p259_p10), 130048   ;;  %v543_v30 = vld [vmem:[%s1143_s5] sm:$0xff] (!%p259_p10)  ;;  %vm437_vm14 = vcmask (!%p259_p10), 130080   ;;  %vm451_vm15 = vcmask (!%p259_p10), 130064  }
  0x13   : > { %v545_v31 = vld [vmem:[%s1144_s6] sm:$0xff] (!%p259_p10)  ;;  %s936_s18 = smov (!%p259_p10), [#allocation6]  }
  0x14   : > { %v453_v37 = vld [vmem:[%s1141_s3] sm:$0xff] (!%p259_p10) }
  0x16   : > { %s293_s15 = scalar_select %p292_p11, %s918_s27, 1  ;;  %v317_v4 = vld [vmem:[#allocation4] sm:$0xf] }
  0x17   : > { %v307_v5 = vld [vmem:[#allocation4] sm:$0xf]  ;;  %319 = vrot.lane.b32.xlu0 %v317_v4, %s931_s21 }
  0x18   : > { %s727_s16 = sshll.u32 %s293_s15, 2  ;;  %309 = vst.msk [vmem:[#allocation2] sm:$0xf] %vm303_vm0, %v307_v5  ;;  %vm463_vm0 = vcmask 195584  }
  0x19   : > { %s1039_s19 = scalar_lea.vmem %s1138_s0, %s727_s16  ;;  %v439_v16 = vld [vmem:[#allocation5] sm:$0xff]  ;;  %s1090_s16 = scalar_lea.hbm %s1145_s7, %s737_s30 }
  0x1a   : > { %v324_v2 = vld [vmem:[%s1039_s19] sm:$0xf]  ;;  %431 = vst.msk [vmem:[#allocation3] sm:$0xff] %vm305_vm10, %v439_v16 }
  0x1b   : > { %v331_v3 = vld [vmem:[%s1039_s19] sm:$0xf]  ;;  %326 = vrot.lane.b32.xlu1 %v324_v2, %s930_s20 }
  0x1c   : > { %333 = vst.msk [vmem:[#allocation2 + $0x8] sm:$0xf] %vm332_vm1, %v331_v3  ;;  %v310_v6 = vld [vmem:[%s1039_s19] sm:$0xf] }
  0x1d   : > { %312 = vrot.lane.b32.xlu0 %v310_v6, %s933_s22  ;;  %v544_v29 = vld [vmem:[%s1039_s19] sm:$0xf] }
  0x1f   : > { %340 = vperm.xlu1 %840, %v337_v7  }
  0x21   : > { %441 = vrot.lane.b32.xlu0 %v439_v16, %s931_s21  ;;  %s852_s21 = sshll.u32 %s936_s18, 4  ;;  %s853_s21 = int_to_ptr.vmem [resolvable:$false] %s852_s21 }
  0x22   : > { %s854_s19 = scalar_lea.vmem %s853_s21, 256 }
  0x23   : > { %v336_v12 = vld [vmem:[#allocation2 + $0x8] sm:$0xf] }
  0x89   : > { %v320_v10 = vpop.permute.xlu0 %319 }
  0x8a   : > { %323 = vst.msk [vmem:[#allocation2 + $0x4] sm:$0xf] %vm322_vm3, %v320_v10 }
  0x8d   : > { %v327_v9 = vpop.permute.xlu1 %326 }
  0x8e   : > { %330 = vst.msk [vmem:[#allocation2 + $0x4] sm:$0xf] %vm329_vm4, %v327_v9 }
  0x8f   : > { %v313_v11 = vpop.permute.xlu0 %312 }
  0x90   : > { %316 = vst.msk [vmem:[#allocation2] sm:$0xf] %vm315_vm5, %v313_v11 }
  0x93   : > { %v442_v23 = vpop.permute.xlu0 %441 }
  0x94   : > { %445 = vst.msk [vmem:[#allocation3 + $0x8] sm:$0xff] %vm444_vm11, %v442_v23 }
  0x97   : > { %v335_v13 = vld [vmem:[#allocation2] sm:$0xff] }
  0x98   : > { %v771_v14 = vpack.c.bf16 %v336_v12, %v335_v13 }
  0x9a   : > { %773 = vmatpush3.bf16.msk.msra.mxu0 %vm772_vm8, %v771_v14 }
  0x9b   : > { %765 = vmatprep.subr.mxu0 %v928_v0 }
  0x9d   : > { %754 = vmatmul.mubr.msk.f32.vlgmr.msra.gmra.mrb[0].mxu0 %vm343_vm9, %v334_v15 }
  0x9e   : > { %767 = vmatprep.mubr.msk.f32.mxu0 %vm932_vm2, %v928_v0  ;;  %v341_v17 = vpop.permute.xlu1 %340  ;;  %766 = vmatpush3.msk.msra.mxu0 %vm347_vm6, %v544_v29 }
  0xa1   : > { %768 = vmatmul.mubr.msk.f32.vlgmr.msra.gmra.mrb[2].mxu0 %vm305_vm10, %v543_v30 }
 0x170   : > { %v417_v18 = vpop.f32.mrb[0].mxu0 }
 0x171   : > { %v418_v19 = vadd.f32 %v417_v18, %v341_v17  ;;  %v755_v20 = vpop.f32.mrb[1].mxu0 }
 0x173   : > { %v422_v21 = vmin.f32 %v418_v19, 0.0  ;;  %vm421_vm13 = vcmp.gt.f32.partialorder %v418_v19, 0.0 }
 0x174   : > { %v623_v38 = vpop.f32.mrb[2].mxu0 }
 0x175   : > { %v423_v22 = vmul.f32 1.442695, %v422_v21  ;;  %v769_v39 = vpop.f32.mrb[3].mxu0 }
 0x177   : > { %842 = vpow2.f32 %v423_v22 }
 0x181   : > { %v843_v24 = vpop.eup %842 }
 0x182   : > { %v730_v25 = vadd.f32 -1.0, %v843_v24 }
 0x184   : > { %v426_v26 = vsel %vm421_vm13, %v418_v19, %v730_v25 }
 0x185   : > { %428 = vst.msk [vmem:[#allocation3 + $0x10] sm:$0xff] %vm427_vm12, %v426_v26 }
 0x18c   : > { %v446_v27 = vld [vmem:[#allocation3 + $0x10] sm:$0xff] }
 0x18d   : > { %448 = vrot.lane.b32.xlu0 %v446_v27, %s930_s20  ;;  %434 = vrot.lane.b32.xlu1 %v446_v27, %s933_s22  ;;  %s289_s22 = sand.u32 1, %s910_s25  }
 0x18e   : > { %s726_s23 = sshll.u32 %s289_s22, 3  ;;  %s636_s17 = scalar_lea.sflag [#allocation7], %s289_s22 }
 0x18f   : > { %s291_s8 = scalar_lea.vmem [#allocation6], %s726_s23 }
 0x190   : > { %s650_s10 = sshll.u32 %s291_s8, 4  ;;  %s1092_s10 = int_to_ptr.vmem [resolvable:$true] %s650_s10 }
 0x191   : > { %460 = vperm.xlu1 %840, %v457_v28   ;;  %548 = vperm.xlu0 %841, %v545_v31   ;;  %s848_s27 = scalar_lea.vmem %s1092_s10, 128  ;;  %p855_p1 = scmp.lt.s32.totalorder %s1092_s10, %s853_s21 }
 0x192   : > { %p849_p12 = scmp.ne.s32.totalorder %s1092_s10, %s848_s27  ;;  %p856_p2 = scmp.lt.s32.totalorder %s854_s19, %s848_s27 }
 0x194   : > { %p850_p13 = pnand %p849_p12, %p1017_p4  ;;  %p857_p3 = por %p856_p2, %p855_p1 }
 0x196   : > { %p851_p0 = pneg %p850_p13 }
 0x198   : > { %p858_p5 = pnand %p857_p3, %p851_p0 }
 0x1ff   : > { %v435_v32 = vpop.permute.xlu1 %434  ;;  %v449_v33 = vpop.permute.xlu0 %448 }
 0x200   : > { %438 = vst.msk [vmem:[#allocation3] sm:$0xff] %vm437_vm14, %v435_v32 }
 0x201   : > { %452 = vst.msk [vmem:[#allocation3 + $0x8] sm:$0xff] %vm451_vm15, %v449_v33 }
 0x207   : > { %v454_v34 = vld [vmem:[#allocation3] sm:$0xff] }
 0x208   : > { %v455_v35 = vld [vmem:[#allocation3 + $0x8] sm:$0xff] }
 0x209   : > { %v775_v36 = vpack.c.bf16 %v455_v35, %v454_v34 }
 0x20b   : > { %776 = vmatpush3.bf16.msra.mxu1 %v775_v36 }
 0x20c   : > { %760 = vmatprep.subr.mxu1 %v928_v0 }
 0x20f   : > { %761 = vmatpush3.msra.mxu1 %v446_v27 }
 0x210   : > { %763 = vmatmul.mubr.msk.f32.vlgmr.msra.gmra.mrb[0].mxu1 %vm463_vm0, %v453_v37  ;;  %v461_v40 = vpop.permute.xlu1 %460  ;;  %v549_v46 = vpop.permute.xlu0 %548 }
 0x211   : > { %v624_v48 = vadd.f32 %v623_v38, %v549_v46 }
 0x2e3   : > { %v533_v41 = vpop.f32.mrb[0].mxu1 }
 0x2e4   : > { %v534_v42 = vadd.f32 %v533_v41, %v461_v40  ;;  %v764_v43 = vpop.f32.mrb[1].mxu1 }
 0x2e6   : > { %v538_v44 = vmin.f32 %v534_v42, 0.0  ;;  %vm537_vm1 = vcmp.gt.f32.partialorder %v534_v42, 0.0 }
 0x2e8   : > { %v539_v45 = vmul.f32 1.442695, %v538_v44 }
 0x2ea   : > { %844 = vpow2.f32 %v539_v45 }
 0x2f4   : > { %v845_v47 = vpop.eup %844 }
 0x2f5   : > { %v732_v49 = vadd.f32 -1.0, %v845_v47 }
 0x2f7   : > { %v542_v50 = vsel %vm537_vm1, %v534_v42, %v732_v49 }
 0x2f8   : > { %v627_v51 = vadd.f32 %v624_v48, %v542_v50 }
 0x2fa   : > { %v629_v52 = vmin.f32 %v627_v51, 0.0  ;;  %vm628_vm2 = vcmp.gt.f32.partialorder %v627_v51, 0.0 }
 0x2fc   : > { %v630_v53 = vmul.f32 1.442695, %v629_v52 }
 0x2fe   : > { %846 = vpow2.f32 %v630_v53 }
 0x308   : > { %v847_v54 = vpop.eup %846 }
 0x309   : > { %v735_v55 = vadd.f32 -1.0, %v847_v54 }
 0x30b   : > { %v633_v56 = vsel %vm628_vm2, %v627_v51, %v735_v55 }
 0x30c   : > { %634 = vst.msk [vmem:[%s291_s8] sm:$0xff] %vm427_vm12, %v633_v56 }
 0x30d   : > { %861 = shalt.err (!%p858_p5)
}
 0x30e   : > { %s862_s20 = scalar_lea.hbm %s1090_s16, 128  ;;  %s866_s30 = scalar_lea.hbm %s1145_s7, 256 }
 0x30f   : > { %p863_p6 = scmp.ne.s32.totalorder %s1090_s16, %s862_s20  ;;  %p867_p10 = scmp.lt.u32.totalorder %s1090_s16, %s1145_s7 }
 0x310   : > { %p868_p11 = scmp.lt.u32.totalorder %s866_s30, %s862_s20  ;;  %p870_p13 = scmp.lt.u32.totalorder %s862_s20, %s1090_s16 }
 0x311   : > { %p864_p7 = pnand %p863_p6, %p1017_p4 }
 0x312   : > { %p869_p12 = por %p868_p11, %p867_p10 }
 0x313   : > { %p865_p9 = pneg %p864_p7 }
 0x314   : > { %p871_p0 = por %p870_p13, %p869_p12 }
 0x316   : > { %p872_p1 = pnand %p871_p0, %p865_p9 }
 0x318   : > { %875 = shalt.err (!%p872_p1)
}
 0x319   : > { %777 = dma.vmem_to_hbm [thread:$0]  (%p1017_p4), %s1092_s10, 128, %s1090_s16, %s636_s17  }
 0x31a PF: > { %p783_p2 = scmp.ge.s32.totalorder %s926_s29, 2  ;;  %s662_s15 = sand.u32 1, %s906_s24  }
 0x31b   : > { %s663_s27 = scalar_lea.sflag [#allocation7], %s662_s15 }
 0x31c   : > { %p780_p3 = pnand %p783_p2, %p1024_p8 }
 0x31e   : > { %901 = dma.done.wait (!%p780_p3), %s663_s27, 128  }
 0x31f   : > { %903 = vsyncadd (!%p780_p3), %s663_s27, 4294967168  ;;  %s20_s29 = sadd.s32 1, %s926_s29   ;;  %s1148_s24 = smov %s910_s25 }
 0x320   : > { %p17_p5 = scmp.ge.s32.totalorder %s20_s29, 4   ;;  %s1149_s25 = smov %s914_s26 }
 0x321   : > { %s1150_s26 = smov %s1030_s14  ;;  %s1151_s27 = smov %s922_s28 }
 0x322   : > { %s1152_s28 = smov %s1154_s9  ;;  %19 = sbr.rel (!%p17_p5) target bundleno = 4 (0x4), region = 87 }
 0x329   :  { %668 = vsyncpa [#allocation7], 1 }
 0x32a   :  { %670 = vsyncpa [#allocation7 + $0x1], 1 }

</bundles_post_ra>
